<compile_context>
chip_gen: v7x
topology: tpu7x:2x2x1
jax: 0.10.0
libtpu: 0.0.40
codegen_flags: <defaults>
</compile_context>

<pallas_src>
import functools
import math

import numpy as np
import jax
import jax.numpy as jnp
from jax import lax
from jax.experimental import pallas as pl
from jax.experimental.pallas import tpu as pltpu


def _brc_loss_kernel(feat_ref, posw_ref, lmask_ref, c_ref, loss_ref, *,
                     sqrt_inv_t, inv_t, loss_scale, mm_dtype):
    """One grid step: `bt` samples fused into a single (M, M) gram tile.

    feat_ref : (M, D)  native-dtype features (M = padded bt * n_views * num_class)
    posw_ref : (M, M)  column-scaled positives: posw[k, j] = pos[j, k] / (rowsum_j + 1e-6)
    lmask_ref: (M, M)  symmetric block-diag logits mask (1 within a sample, 0 on
                       the diagonal and across samples; padded rows get a 1 on
                       their own diagonal so their discarded logsumexp is finite)
    c_ref    : (1, M)  rowsum_j / (rowsum_j + 1e-6)
    loss_ref : (1, M)  per-row loss  -(T/base_T) * mean_log_prob_pos  (lane-dense)
    """
    x = feat_ref[...].astype(jnp.float32)                         # (M, D)
    # F.normalize(dim=1), eps = 1e-12  (rsqrt -> EUP slot, frees VALU)
    sumsq = jnp.sum(x * x, axis=1, keepdims=True)
    xn = x * lax.rsqrt(jnp.maximum(sumsq, 1e-24))

    # Fold 1/T into both matmul operands (sqrt on each side keeps s EXACTLY
    # symmetric) and subtract the constant row max (= 1/T: the diagonal of a
    # gram of unit-norm rows, and |cos| <= 1).  The loss is exactly
    # per-row-shift invariant, so this matches both is_stable branches.
    xs = (xn * sqrt_inv_t).astype(mm_dtype)
    s = lax.dot_general(xs, xs, (((1,), (1,)), ((), ())),
                        preferred_element_type=jnp.float32) - inv_t   # (M, M)

    exp_logits = jnp.exp(s) * lmask_ref[...]
    # s and lmask are symmetric -> column sums equal the reference's row sums,
    # so both reductions produce lane-dense (1, M) rows directly.
    log_z = jnp.log(jnp.sum(exp_logits, axis=0, keepdims=True))       # (1, M)
    numer = jnp.sum(posw_ref[...] * s, axis=0, keepdims=True)         # (1, M)
    loss_ref[...] = loss_scale * (numer - c_ref[...] * log_z)


def brc_loss(outputs, targets, features, adjacent_matrix=None, *,
             temperature=0.1, base_temperature=1.0, lambda_ctr=1.0,
             pcc_threshold=0.5, is_weights=True, is_stable=False,
             weights=None, ctr_enable=True):
    del targets  # unused by the reference forward
    # is_stable: the constant-1/T shift applied in-kernel is exactly equivalent
    # to both branches of the reference (per-row shift invariance), so the flag
    # does not change the result.
    del is_stable
    if not ctr_enable:
        return jnp.float32(0.0)
    if features.ndim < 3:
        raise ValueError("`features` needs to be [bsz, n_views, ...]")
    if features.ndim > 3:
        features = features.reshape(features.shape[0], features.shape[1], -1)

    bsz, n_views, feat_dim = features.shape
    num_class = outputs.shape[-1]
    n = n_views * num_class
    d = feat_dim // num_class

    # ---- thresholded adjacency graph -> per-sample positive mask (__init__) ----
    if adjacent_matrix is None:
        graph = np.eye(num_class, dtype=np.float32)
    else:
        graph = np.asarray(adjacent_matrix, np.float32).copy()
        if is_weights:
            graph = np.where(graph > pcc_threshold, 1.0, 0.0).astype(np.float32)
        else:
            graph = np.where(graph <= pcc_threshold, 0.0, graph).astype(np.float32)
    mask_nn = np.tile(graph, (n_views, n_views))                   # (n, n)
    eye_nn = np.eye(n, dtype=np.float32)
    pos_nn = mask_nn * (1.0 - eye_nn)                              # self-contrast removed
    lmask_nn = np.ones((n, n), np.float32) - eye_nn

    # ---- per-chip fused-tile target ----
    try:
        kind = jax.devices()[0].device_kind.lower()
    except Exception:
        kind = ""
    is_v5e = ("v5 lite" in kind) or ("v5e" in kind)
    is_v7 = "v7" in kind
    target_rows = 128 if is_v5e else 256     # v5e MXU 128x128; v6e/v7x 256x256

    bt = max(1, min(bsz, max(1, target_rows // n)))
    if is_v7 and bsz >= 2:
        # keep >= 2 grid steps so both v7x TensorCores get work on the parallel axis
        bt = min(bt, -(-bsz // 2))
    num_tiles = -(-bsz // bt)
    bsz_pad = num_tiles * bt
    m_raw = bt * n
    # Pad the fused tile to a lane/sublane-dense size; the extra rows are zeroed
    # by the block-diagonal masks and sliced away after the call.
    if m_raw > 128:
        m = -(-m_raw // 128) * 128
    elif m_raw > 8:
        m = -(-m_raw // 8) * 8
    else:
        m = m_raw

    # ---- host-precomputed masks for the fused (m, m) tile (VMEM-resident) ----
    pos_big = np.zeros((m, m), np.float32)
    lmask_big = np.zeros((m, m), np.float32)
    for b in range(bt):
        sl = slice(b * n, (b + 1) * n)
        pos_big[sl, sl] = pos_nn
        lmask_big[sl, sl] = lmask_nn
    for r in range(m_raw, m):            # padded rows: finite (discarded) logsumexp
        lmask_big[r, r] = 1.0
    rowsum = pos_big.sum(axis=1, keepdims=True)                    # (m, 1)
    invp = 1.0 / (rowsum + 1e-6)
    pos_w = np.ascontiguousarray((pos_big * invp).T)               # posw[k, j] = pos[j, k] * invp[j]
    c_row = (rowsum * invp).reshape(1, m).astype(np.float32)       # (1, m)

    # ---- feature layout: (num_tiles, m, d), native dtype on the wire ----
    feats = features.reshape(bsz, n, d)
    if bsz_pad != bsz:
        feats = jnp.concatenate(
            [feats, jnp.zeros((bsz_pad - bsz, n, d), feats.dtype)], axis=0)
    feats = feats.reshape(num_tiles, m_raw, d)
    if m != m_raw:
        feats = jnp.concatenate(
            [feats, jnp.zeros((num_tiles, m - m_raw, d), feats.dtype)], axis=1)

    mm_dtype = jnp.bfloat16 if feats.dtype == jnp.bfloat16 else jnp.float32
    inv_t = float(1.0 / temperature)
    kernel = functools.partial(
        _brc_loss_kernel,
        sqrt_inv_t=float(math.sqrt(inv_t)),
        inv_t=inv_t,
        loss_scale=float(-(temperature / base_temperature)),
        mm_dtype=mm_dtype)

    # TODO(synk): for very large num_class (m >~ 1k) single-buffer the resident
    # masks (pipeline_mode=pl.Buffered(1)), store them in bf16/int8 (or build
    # lmask from an in-kernel iota), raise vmem_limit_bytes, and column-tile the
    # (m, m) intermediates with an online logsumexp to fit v7x's 64 MiB VMEM.
    loss_rows = pl.pallas_call(
        kernel,
        out_shape=jax.ShapeDtypeStruct((num_tiles, 1, m), jnp.float32),
        grid_spec=pltpu.PrefetchScalarGridSpec(
            num_scalar_prefetch=0,
            grid=(num_tiles,),
            in_specs=[
                pl.BlockSpec((None, m, d), lambda b: (b, 0, 0)),   # bt samples / step
                pl.BlockSpec((m, m), lambda b: (0, 0)),            # resident pos_w
                pl.BlockSpec((m, m), lambda b: (0, 0)),            # resident logits mask
                pl.BlockSpec((1, m), lambda b: (0, 0)),            # resident c row
            ],
            out_specs=pl.BlockSpec((None, 1, m), lambda b: (b, 0, 0)),  # lane-dense loss row
        ),
        compiler_params=pltpu.CompilerParams(
            dimension_semantics=("parallel",)),      # split batch across TCs (v7x)
    )(feats, jnp.asarray(pos_w), jnp.asarray(lmask_big), jnp.asarray(c_row))

    loss_rows = loss_rows.reshape(num_tiles, m)[:, :m_raw]
    per_sample = jnp.mean(loss_rows.reshape(bsz_pad, n), axis=1)[:bsz]
    if weights is not None:
        per_sample = per_sample * (1.0 - jnp.asarray(weights, jnp.float32))
    return lambda_ctr * jnp.sum(per_sample) / bsz


def brc_loss_numpy_ref(outputs, features, adjacent_matrix, *,
                       temperature=0.1, base_temperature=1.0, lambda_ctr=1.0,
                       pcc_threshold=0.5, is_weights=True, is_stable=False,
                       weights=None):
    """Faithful numpy transcription of the PyTorch forward (n_views == 1 regime)."""
    feats = np.asarray(features, np.float64)
    if feats.ndim > 3:
        feats = feats.reshape(feats.shape[0], feats.shape[1], -1)
    bsz, n_views, _ = feats.shape
    num_class = outputs.shape[-1]
    graph = np.asarray(adjacent_matrix, np.float64).copy()
    if is_weights:
        graph[graph > pcc_threshold] = 1.0
        graph[graph <= pcc_threshold] = 0.0
    else:
        graph[graph <= pcc_threshold] = 0.0
    mask = graph
    losses = []
    for i in range(bsz):
        sf = feats[i].reshape(n_views * num_class, -1)
        sf = sf / np.maximum(np.linalg.norm(sf, axis=1, keepdims=True), 1e-12)
        vdp = (sf @ sf.T) / temperature
        if is_stable:
            vdp = vdp - vdp.max(axis=1, keepdims=True)
        mask = np.tile(mask, (n_views, n_views))
        n = n_views * num_class
        logits_mask = np.ones_like(mask)
        logits_mask[np.arange(n), np.arange(n)] = 0.0
        mask = mask * logits_mask
        exp_logits = np.exp(vdp) * logits_mask
        log_prob = vdp - np.log(exp_logits.sum(1, keepdims=True))
        mlpp = (mask * log_prob).sum(1) / (mask.sum(1) + 1e-6)
        losses.append((-(temperature / base_temperature) * mlpp)
                      .reshape(n_views, num_class).mean())
    losses = np.asarray(losses)
    if weights is not None:
        losses = losses * (1.0 - np.asarray(weights, np.float64))
    return lambda_ctr * losses.sum() / bsz


if __name__ == "__main__":
    key = jax.random.PRNGKey(0)
    k1, k2, k3 = jax.random.split(key, 3)

    batch, n_views, num_class, d_per_class = 2, 1, 4, 32
    feat_dim = num_class * d_per_class

    outputs = jax.random.normal(k1, (batch, num_class), dtype=jnp.float32)
    targets = jax.random.randint(k2, (batch,), 0, num_class)
    features = jax.random.normal(k3, (batch, n_views, feat_dim), dtype=jnp.float32)

    # deterministic PCC-style adjacency matrix (symmetric, values in [0, 1])
    adjacent_matrix = np.array([[1.0, 0.8, 0.3, 0.6],
                                [0.8, 1.0, 0.2, 0.4],
                                [0.3, 0.2, 1.0, 0.7],
                                [0.6, 0.4, 0.7, 1.0]], dtype=np.float32)

    loss = brc_loss(outputs, targets, features, adjacent_matrix,
                    temperature=0.1, base_temperature=1.0, lambda_ctr=1.0,
                    pcc_threshold=0.5, is_weights=True, is_stable=False)
    loss = jax.block_until_ready(loss)

    ref = brc_loss_numpy_ref(np.asarray(outputs), np.asarray(features),
                             adjacent_matrix,
                             temperature=0.1, base_temperature=1.0,
                             lambda_ctr=1.0, pcc_threshold=0.5,
                             is_weights=True, is_stable=False)

    np.testing.assert_allclose(np.asarray(loss), ref, rtol=2e-4, atol=1e-5)
    print("KERNEL_OK")
</pallas_src>

<mosaic_0001>
module attributes {stable_mosaic.version = 11 : i64} {
  func.func @_brc_loss_kernel(%arg0: i32, %arg1: memref<1x8x32xf32, #tpu.memory_space<vmem>>, %arg2: memref<8x8xf32, #tpu.memory_space<vmem>>, %arg3: memref<8x8xf32, #tpu.memory_space<vmem>>, %arg4: memref<1x8xf32, #tpu.memory_space<vmem>>, %arg5: memref<1x1x8xf32, #tpu.memory_space<vmem>>) attributes {dimension_semantics = [#tpu.dimension_semantics<parallel>], iteration_bounds = array<i64: 1>, scalar_prefetch = 0 : i64, scratch_operands = 0 : i64, tpu.core_type = #tpu.core_type<tc>, window_params = [{transform_indices = @transform_0, window_bounds = array<i64: 1, 8, 32>}, {pipeline_mode = #tpu.pipeline_mode<synchronous>, transform_indices = @transform_1, window_bounds = array<i64: 8, 8>}, {pipeline_mode = #tpu.pipeline_mode<synchronous>, transform_indices = @transform_2, window_bounds = array<i64: 8, 8>}, {pipeline_mode = #tpu.pipeline_mode<synchronous>, transform_indices = @transform_3, window_bounds = array<i64: 1, 8>}, {transform_indices = @transform_4, window_bounds = array<i64: 1, 1, 8>}]} {
    %c0 = arith.constant 0 : index
    %c0_0 = arith.constant 0 : index
    %c0_1 = arith.constant 0 : index
    %0 = vector.load %arg1[%c0, %c0_0, %c0_1] : memref<1x8x32xf32, #tpu.memory_space<vmem>>, vector<1x8x32xf32>
    %1 = vector.shape_cast %0 : vector<1x8x32xf32> to vector<8x32xf32>
    %2 = arith.mulf %1, %1 : vector<8x32xf32>
    %cst = arith.constant dense<0.000000e+00> : vector<8xf32>
    %3 = vector.multi_reduction <add>, %2, %cst [1] : vector<8x32xf32> to vector<8xf32>
    %4 = vector.shape_cast %3 : vector<8xf32> to vector<8x1xf32>
    %cst_2 = arith.constant 1.000000e-24 : f32
    %5 = vector.broadcast %cst_2 : f32 to vector<8x1xf32>
    %6 = arith.maximumf %4, %5 : vector<8x1xf32>
    %7 = math.rsqrt %6 : vector<8x1xf32>
    %8 = vector.broadcast %7 : vector<8x1xf32> to vector<8x32xf32>
    %9 = arith.mulf %1, %8 : vector<8x32xf32>
    %cst_3 = arith.constant 3.1622777 : f32
    %10 = vector.broadcast %cst_3 : f32 to vector<8x32xf32>
    %11 = arith.mulf %9, %10 : vector<8x32xf32>
    %cst_4 = arith.constant dense<0.000000e+00> : vector<8x8xf32>
    %12 = tpu.matmul %11, %11, %cst_4 {dimension_numbers = #tpu.dot_dimension_numbers<[1], [1], [0], [0], [0, 0, 1, 0], [], []>} : vector<8x32xf32>, vector<8x32xf32>, vector<8x8xf32> -> vector<8x8xf32>
    %cst_5 = arith.constant 1.000000e+01 : f32
    %13 = vector.broadcast %cst_5 : f32 to vector<8x8xf32>
    %14 = arith.subf %12, %13 : vector<8x8xf32>
    %15 = math.exp %14 : vector<8x8xf32>
    %c0_6 = arith.constant 0 : index
    %c0_7 = arith.constant 0 : index
    %16 = vector.load %arg3[%c0_6, %c0_7] : memref<8x8xf32, #tpu.memory_space<vmem>>, vector<8x8xf32>
    %17 = arith.mulf %15, %16 : vector<8x8xf32>
    %cst_8 = arith.constant dense<0.000000e+00> : vector<8xf32>
    %18 = vector.multi_reduction <add>, %17, %cst_8 [0] : vector<8x8xf32> to vector<8xf32>
    %19 = vector.shape_cast %18 : vector<8xf32> to vector<1x8xf32>
    %20 = math.log %19 : vector<1x8xf32>
    %c0_9 = arith.constant 0 : index
    %c0_10 = arith.constant 0 : index
    %21 = vector.load %arg2[%c0_9, %c0_10] : memref<8x8xf32, #tpu.memory_space<vmem>>, vector<8x8xf32>
    %22 = arith.mulf %21, %14 : vector<8x8xf32>
    %cst_11 = arith.constant dense<0.000000e+00> : vector<8xf32>
    %23 = vector.multi_reduction <add>, %22, %cst_11 [0] : vector<8x8xf32> to vector<8xf32>
    %24 = vector.shape_cast %23 : vector<8xf32> to vector<1x8xf32>
    %c0_12 = arith.constant 0 : index
    %c0_13 = arith.constant 0 : index
    %25 = vector.load %arg4[%c0_12, %c0_13] : memref<1x8xf32, #tpu.memory_space<vmem>>, vector<1x8xf32>
    %26 = arith.mulf %25, %20 : vector<1x8xf32>
    %27 = arith.subf %24, %26 : vector<1x8xf32>
    %cst_14 = arith.constant -1.000000e-01 : f32
    %28 = vector.broadcast %cst_14 : f32 to vector<1x8xf32>
    %29 = arith.mulf %28, %27 : vector<1x8xf32>
    %c0_15 = arith.constant 0 : index
    %c0_16 = arith.constant 0 : index
    %c0_17 = arith.constant 0 : index
    %30 = vector.load %arg5[%c0_15, %c0_16, %c0_17] : memref<1x1x8xf32, #tpu.memory_space<vmem>>, vector<1x1x8xf32>
    %31 = vector.shape_cast %30 : vector<1x1x8xf32> to vector<1x8xf32>
    %32 = vector.shape_cast %29 : vector<1x8xf32> to vector<1x1x8xf32>
    tpu.vector_store %arg5[%c0_15, %c0_16, %c0_17], %32 {strides = array<i32>} : memref<1x1x8xf32, #tpu.memory_space<vmem>>, vector<1x1x8xf32>,
    return
  }
  func.func @transform_0(%arg0: i32) -> (i32, i32, i32) {
    %c0_i32 = arith.constant 0 : i32
    %c0_i32_0 = arith.constant 0 : i32
    %c0_i32_1 = arith.constant 0 : i32
    return %arg0, %c0_i32, %c0_i32_0 : i32, i32, i32
  }
  func.func @transform_1(%arg0: i32) -> (i32, i32) {
    %c0_i32 = arith.constant 0 : i32
    %c0_i32_0 = arith.constant 0 : i32
    %c0_i32_1 = arith.constant 0 : i32
    return %c0_i32, %c0_i32_0 : i32, i32
  }
  func.func @transform_2(%arg0: i32) -> (i32, i32) {
    %c0_i32 = arith.constant 0 : i32
    %c0_i32_0 = arith.constant 0 : i32
    %c0_i32_1 = arith.constant 0 : i32
    return %c0_i32, %c0_i32_0 : i32, i32
  }
  func.func @transform_3(%arg0: i32) -> (i32, i32) {
    %c0_i32 = arith.constant 0 : i32
    %c0_i32_0 = arith.constant 0 : i32
    %c0_i32_1 = arith.constant 0 : i32
    return %c0_i32, %c0_i32_0 : i32, i32
  }
  func.func @transform_4(%arg0: i32) -> (i32, i32, i32) {
    %c0_i32 = arith.constant 0 : i32
    %c0_i32_0 = arith.constant 0 : i32
    %c0_i32_1 = arith.constant 0 : i32
    return %arg0, %c0_i32, %c0_i32_0 : i32, i32, i32
  }
}

</mosaic_0001>

<bundles_post_ra>
// kernel: tpu_custom_call.1
= control target key start
LH: loop header
LB: loop body
LE: loop exit
PB: predicated region body
PF: predicated region fallthrough
CT: control target
= control target key end

     0   :  { %9 = vsyncpa [#allocation3], 0  ;;  %s380_s0 = inlined_call_operand.hbm [shape: f32[1,8,32], index: 0, kind: input, shape index: {}]   ;;  %s381_s1 = inlined_call_operand.hbm [shape: f32[8,8], index: 1, kind: input, shape index: {}]   ;;  %s382_s2 = inlined_call_operand.hbm [shape: f32[8,8], index: 2, kind: input, shape index: {}]   ;;  %s383_s3 = inlined_call_operand.vmem [shape: f32[1,8], index: 3, kind: input, shape index: {}]   ;;  %s384_s4 = inlined_call_operand.hbm [shape: f32[1,1,8], index: 4, kind: output, shape index: {}]  }
   0x1   :  { %10 = vsyncpa [#allocation6], 0 }
   0x2   :  { %11 = vsyncpa [#allocation4], 0  ;;  %s298_s15 = smov [#allocation5]   ;;  %s299_s17 = smov [#allocation2]  }
   0x3   :  { %s28_s16 = sshll.u32 %s298_s15, 4  ;;  %s18_s18 = sshll.u32 %s299_s17, 4  ;;  %s29_s16 = int_to_ptr.vmem [resolvable:$true] %s28_s16  ;;  %s19_s18 = int_to_ptr.vmem [resolvable:$true] %s18_s18 }
   0x4   :  { %s204_s21 = scalar_lea.hbm %s381_s1, 128 }
   0x5   :  { %p205_p0 = scmp.ne.s32.totalorder %s381_s1, %s204_s21  ;;  %p208_p1 = scmp.lt.u32.totalorder %s204_s21, %s381_s1 }
   0x7   :  { %p210_p2 = pnand %p208_p1, %p205_p0 }
   0x9   :  { %213 = shalt.err (!%p210_p2)
}
   0xa   :  { %s214_s26 = scalar_lea.vmem %s29_s16, 128  ;;  %p219_p4 = scmp.lt.s32.totalorder %s29_s16, %s29_s16 }
   0xb   :  { %p215_p3 = scmp.ne.s32.totalorder %s29_s16, %s214_s26  ;;  %p220_p5 = scmp.lt.s32.totalorder %s214_s26, %s214_s26 }
   0xd   :  { %p221_p6 = por %p220_p5, %p219_p4 }
   0xf   :  { %p222_p7 = pnand %p221_p6, %p215_p3 }
  0x11   :  { %225 = shalt.err (!%p222_p7)
}
  0x12   :  { %31 = dma.hbm_to_vmem [thread:$0]  %s381_s1, 128, %s29_s16, [#allocation6]  }
  0x13   :  { %s226_s5 = scalar_lea.hbm %s380_s0, 128 }
  0x14   :  { %p227_p8 = scmp.ne.s32.totalorder %s380_s0, %s226_s5  ;;  %p230_p9 = scmp.lt.u32.totalorder %s226_s5, %s380_s0 }
  0x16   :  { %p232_p10 = pnand %p230_p9, %p227_p8 }
  0x18   :  { %235 = shalt.err (!%p232_p10)
}
  0x19   :  { %s236_s10 = scalar_lea.vmem %s19_s18, 128  ;;  %p241_p12 = scmp.lt.s32.totalorder %s19_s18, %s19_s18 }
  0x1a   :  { %p237_p11 = scmp.ne.s32.totalorder %s19_s18, %s236_s10  ;;  %p242_p13 = scmp.lt.s32.totalorder %s236_s10, %s236_s10 }
  0x1c   :  { %p243_p0 = por %p242_p13, %p241_p12 }
  0x1e   :  { %p244_p1 = pnand %p243_p0, %p237_p11 }
  0x20   :  { %247 = shalt.err (!%p244_p1)
}
  0x21   :  { %21 = dma.hbm_to_vmem [thread:$0]  %s380_s0, 128, %s19_s18, [#allocation3]  }
  0x22   :  { %s300_s12 = smov [#allocation7]   ;;  %s248_s16 = scalar_lea.hbm %s382_s2, 128 }
  0x23   :  { %s38_s13 = sshll.u32 %s300_s12, 4  ;;  %p249_p2 = scmp.ne.s32.totalorder %s382_s2, %s248_s16  ;;  %s39_s13 = int_to_ptr.vmem [resolvable:$true] %s38_s13 }
  0x24   :  { %p252_p3 = scmp.lt.u32.totalorder %s248_s16, %s382_s2 }
  0x26   :  { %p254_p4 = pnand %p252_p3, %p249_p2 }
  0x28   :  { %257 = shalt.err (!%p254_p4)
}
  0x29   :  { %s258_s22 = scalar_lea.vmem %s39_s13, 128  ;;  %p263_p6 = scmp.lt.s32.totalorder %s39_s13, %s39_s13 }
  0x2a   :  { %p259_p5 = scmp.ne.s32.totalorder %s39_s13, %s258_s22  ;;  %p264_p7 = scmp.lt.s32.totalorder %s258_s22, %s258_s22 }
  0x2c   :  { %p265_p8 = por %p264_p7, %p263_p6 }
  0x2e   :  { %p266_p9 = pnand %p265_p8, %p259_p5 }
  0x30   :  { %269 = shalt.err (!%p266_p9)
}
  0x31   :  { %41 = dma.hbm_to_vmem [thread:$0]  %s382_s2, 128, %s39_s13, [#allocation6]  }
  0x32   :  { %292 = dma.done.wait [#allocation3], 128  }
  0x33   :  { %293 = vsyncadd [#allocation3], 4294967168 }
  0x34   :  { %294 = dma.done.wait [#allocation6], 256  }
  0x35   :  { %295 = vsyncadd [#allocation6], 4294967040  ;;  %v53_v0 = vld [vmem:[#allocation2] sm:$0xff]  ;;  %vm55_vm0 = vcmask 261120   ;;  %v301_v3 = vmov 0.0   ;;  %vm302_vm1 = vmmov 0  }
  0x36   :  { %v54_v1 = vmul.f32 %v53_v0, %v53_v0  ;;  %187 = vmatprep.subr.mxu0 %v301_v3  ;;  %189 = vmatprep.mubr.msk.f32.mxu0 %vm302_vm1, %v301_v3  ;;  %v139_v13 = vld [vmem:[#allocation7] sm:$0xff]  ;;  %v151_v14 = vld [vmem:[#allocation5] sm:$0xff]  ;;  %vm141_vm2 = vcmask 64512   ;;  %v160_v32 = vld [vmem:[%s383_s3] sm:$0x1]  ;;  %s303_s24 = smov [#allocation8]  }
  0x37   :  { %s172_s25 = sshll.u32 %s303_s24, 4  ;;  %vm164_vm3 = vcmask 57344   ;;  %s173_s25 = int_to_ptr.vmem [resolvable:$true] %s172_s25 }
  0x38   :  { %v56_v2 = vsel %vm55_vm0, %v54_v1, 0.0  ;;  %s270_s26 = scalar_lea.vmem %s173_s25, 16  ;;  %s274_s27 = scalar_lea.vmem %s173_s25, 32 }
  0x39   :  { %57 = vadd.xlane.f32.xlu0 %v56_v2  ;;  %p271_p10 = scmp.ne.s32.totalorder %s173_s25, %s270_s26  ;;  %p275_p11 = scmp.lt.s32.totalorder %s173_s25, %s173_s25 }
  0x3a   :  { %p276_p12 = scmp.lt.s32.totalorder %s274_s27, %s270_s26 }
  0x3c   :  { %p277_p13 = por %p276_p12, %p275_p11 }
  0x3e   :  { %p278_p0 = pnand %p277_p13, %p271_p10 }
  0xc6   :  { %v58_v4 = vpop.xlane.xlu0 %57 }
  0xc7   :  { %v59_v5 = vmax.f32 %v58_v4, 1e-24 }
  0xc9   :  { %198 = vrsqrt.f32 %v59_v5 }
  0xd3   :  { %v199_v6 = vpop.eup %198 }
  0xd4   :  { %v61_v7 = vmul.f32 %v199_v6, %v53_v0 }
  0xd6   :  { %v62_v8 = vmul.f32 3.1622777, %v61_v7 }
  0xd8   :  { %188 = vmatpush3.xpose.msk.msra.mxu0 %vm55_vm0, %v62_v8 }
  0xdb   :  { %190 = vmatmul.mubr.msk.f32.vlgmr.msra.gmra.mrb[0].mxu0 %vm55_vm0, %v62_v8 }
 0x1ae   :  { %v132_v9 = vpop.f32.mrb[0].mxu0 }
 0x1af   :  { %v184_v10 = vadd.f32 -10.0, %v132_v9  ;;  %v191_v11 = vpop.f32.mrb[1].mxu0 }
 0x1b1   :  { %v137_v12 = vmul.f32 1.442695, %v184_v10  ;;  %v152_v17 = vmul.f32 %v184_v10, %v151_v14 }
 0x1b3   :  { %200 = vpow2.f32 %v137_v12  ;;  %v153_v21 = vsel %vm141_vm2, %v152_v17, 0.0 }
 0x1b4   :  { %v154_v23 = vrot.slane %v153_v21, 4 }
 0x1b6   :  { %v155_v26 = vadd.f32 %v154_v23, %v153_v21 }
 0x1b8   :  { %v156_v28 = vrot.slane %v155_v26, 2 }
 0x1ba   :  { %v157_v29 = vadd.f32 %v156_v28, %v155_v26 }
 0x1bc   :  { %v158_v30 = vrot.slane %v157_v29, 1 }
 0x1bd   :  { %v201_v15 = vpop.eup %200 }
 0x1be   :  { %v140_v16 = vmul.f32 %v201_v15, %v139_v13  ;;  %v159_v34 = vadd.f32 %v158_v30, %v157_v29 }
 0x1c0   :  { %v142_v18 = vsel %vm141_vm2, %v140_v16, 0.0 }
 0x1c1   :  { %v143_v19 = vrot.slane %v142_v18, 4 }
 0x1c3   :  { %v144_v20 = vadd.f32 %v143_v19, %v142_v18 }
 0x1c5   :  { %v145_v22 = vrot.slane %v144_v20, 2 }
 0x1c7   :  { %v146_v24 = vadd.f32 %v145_v22, %v144_v20 }
 0x1c9   :  { %v147_v25 = vrot.slane %v146_v24, 1 }
 0x1cb   :  { %v148_v27 = vadd.f32 %v147_v25, %v146_v24 }
 0x1cd   :  { %202 = vlog2.f32 %v148_v27 }
 0x1d7   :  { %v203_v31 = vpop.eup %202 }
 0x1d8   :  { %v150_v33 = vmul.f32 0.6931472, %v203_v31 }
 0x1da   :  { %v161_v35 = vmul.f32 %v160_v32, %v150_v33 }
 0x1dc   :  { %v162_v36 = vsub.f32 %v159_v34, %v161_v35 }
 0x1de   :  { %v163_v37 = vmul.f32 -0.1, %v162_v36 }
 0x1e0   :  { %165 = vst.msk [vmem:[#allocation8] sm:$0x1] %vm164_vm3, %v163_v37 }
 0x1e1   :  { %281 = shalt.err (!%p278_p0)
}
 0x1e2   :  { %s282_s29 = scalar_lea.hbm %s384_s4, 16 }
 0x1e3   :  { %p283_p1 = scmp.ne.s32.totalorder %s384_s4, %s282_s29  ;;  %p286_p2 = scmp.lt.u32.totalorder %s282_s29, %s384_s4 }
 0x1e5   :  { %p288_p3 = pnand %p286_p2, %p283_p1 }
 0x1e7   :  { %291 = shalt.err (!%p288_p3)
}
 0x1e8   :  { %175 = dma.vmem_to_hbm [thread:$0]  %s173_s25, 16, %s384_s4, [#allocation4]  }
 0x1e9   :  { %296 = dma.done.wait [#allocation4], 16  }
 0x1ea   :  { %297 = vsyncadd [#allocation4], 4294967280 }
 0x1eb   :  { %179 = vsyncpa [#allocation3], 1 }
 0x1ec   :  { %180 = vsyncpa [#allocation6], 1 }
 0x1ed   :  { %181 = vsyncpa [#allocation4], 1 }

</bundles_post_ra>
